<compile_context>
chip_gen: v6e
topology: v6e:2x2x1
jax: 0.10.0
libtpu: 0.0.40
codegen_flags: <defaults>
</compile_context>

<pallas_src>
import jax
import jax.numpy as jnp
from jax.experimental import pallas as pl
from jax.experimental.pallas import tpu as pltpu

LANE = 128
SUBLANE = 8


def _round_up(n, m):
    return ((n + m - 1) // m) * m


def _cdiv(a, b):
    return -(-a // b)


# ---------------------------------------------------------------------------
# Kernel: fused 4-layer MLP on one (tb, in_dim) row tile. Weights/biases are
# full (hidden-padded) arrays, resident in VMEM across all grid steps.
# ---------------------------------------------------------------------------
def mlp_kernel(x_ref, w1_ref, b1_ref, w2_ref, b2_ref,
               w3_ref, b3_ref, w4_ref, b4_ref, o_ref):
    cdt = w1_ref.dtype  # MXU-input dtype (bf16 or f32); accumulation is f32.

    x = x_ref[...].astype(cdt)                       # in-kernel cast, no wrapper pass
    h = jnp.dot(x, w1_ref[...], preferred_element_type=jnp.float32)
    h = jnp.maximum(h + b1_ref[...], 0.0)            # f32 elementwise (v5e-safe)
    h = jnp.dot(h.astype(cdt), w2_ref[...], preferred_element_type=jnp.float32)
    h = jnp.maximum(h + b2_ref[...], 0.0)
    h = jnp.dot(h.astype(cdt), w3_ref[...], preferred_element_type=jnp.float32)
    h = jnp.maximum(h + b3_ref[...], 0.0)
    y = jnp.dot(h.astype(cdt), w4_ref[...], preferred_element_type=jnp.float32)
    o_ref[...] = (y + b4_ref[...]).astype(o_ref.dtype)   # narrow (tb, out_dim) store
    # TODO(synk): on v5e, split tb into 2 unrolled sub-chunks so the VPU
    # epilogue of layer k overlaps the MXU work of the next chunk (~5-10%).


# ---------------------------------------------------------------------------
# Parameter preparation (once, not per call): pad ONLY the hidden dims to
# multiples of 128 lanes (zeros -> exact same math); W1 rows stay in_dim and
# W4 cols / b4 stay out_dim so the input/output HBM streams are unpadded.
# Weights are cast to the MXU compute dtype (bf16 default), biases stay f32.
# ---------------------------------------------------------------------------
def prepare_params(params, compute_dtype=jnp.bfloat16):
    w1, b1 = params["w1"], params["b1"]
    w2, b2 = params["w2"], params["b2"]
    w3, b3 = params["w3"], params["b3"]
    w4, b4 = params["w4"], params["b4"]

    in_dim, h1 = w1.shape
    h2, h3, out_dim = w2.shape[1], w3.shape[1], w4.shape[1]
    h1p, h2p, h3p = (_round_up(d, LANE) for d in (h1, h2, h3))

    def pad_w(w, rp, cp):
        buf = jnp.zeros((rp, cp), compute_dtype)
        return buf.at[: w.shape[0], : w.shape[1]].set(w.astype(compute_dtype))

    def pad_b(b, cp):
        buf = jnp.zeros((1, cp), jnp.float32)
        return buf.at[:, : b.shape[1]].set(b.astype(jnp.float32))

    return {
        "w1": pad_w(w1, in_dim, h1p), "b1": pad_b(b1, h1p),
        "w2": pad_w(w2, h1p, h2p),    "b2": pad_b(b2, h2p),
        "w3": pad_w(w3, h2p, h3p),    "b3": pad_b(b3, h3p),
        "w4": pad_w(w4, h3p, out_dim),
        "b4": b4.astype(jnp.float32).reshape(1, out_dim),
        "in_dim": in_dim, "out_dim": out_dim,
    }


# ---------------------------------------------------------------------------
# Wrapper: grid over batch rows (ragged last block, no batch padding),
# resident weights, parallel grid axis for megacore.
# ---------------------------------------------------------------------------
def spiking_regressor_output_layer(x, prepared, *, block_rows=256):
    p = prepared
    w1, b1, w2, b2 = p["w1"], p["b1"], p["w2"], p["b2"]
    w3, b3, w4, b4 = p["w3"], p["b3"], p["w4"], p["b4"]
    in_dim, out_dim = p["in_dim"], p["out_dim"]

    B, feat = x.shape
    assert feat == in_dim, f"expected {in_dim} input features, got {feat}"

    # Row tile: multiple of 8 sublanes, adaptive so no batch padding is needed;
    # force an even number of grid steps when >1 so v7x's 2 TCs stay balanced.
    tb_cap = min(block_rows, _round_up(B, SUBLANE))
    n_steps = _cdiv(B, tb_cap)
    if n_steps > 1 and n_steps % 2 == 1:
        n_steps += 1
    tb = _round_up(_cdiv(B, n_steps), SUBLANE)
    grid = (_cdiv(B, tb),)

    def resident(a):  # full-array block, same index every step -> stays in VMEM
        return pl.BlockSpec(a.shape, lambda i: (0, 0))
    # TODO(synk): if hidden dims ever approach v7x's 64 MiB VMEM, single-buffer
    # the resident specs (pipeline_mode=pl.Buffered(1)) and/or tile the widest
    # weight's N over a second "arbitrary" grid axis instead of shrinking tb.

    param_arrays = (w1, b1, w2, b2, w3, b3, w4, b4)
    param_bytes = sum(int(a.size) * a.dtype.itemsize for a in param_arrays)

    # Cost estimate: unpadded input stream, narrow output, params DMA'd once.
    flops = 2 * B * (w1.shape[0] * w1.shape[1] + w2.shape[0] * w2.shape[1]
                     + w3.shape[0] * w3.shape[1] + w4.shape[0] * w4.shape[1])
    bytes_accessed = (B * in_dim * x.dtype.itemsize
                      + param_bytes
                      + B * out_dim * 4)

    # VMEM request: actual usage + headroom, capped at 75% of device capacity.
    max_hidden = max(w1.shape[1], w2.shape[1], w3.shape[1])
    vmem_est = (2 * tb * in_dim * x.dtype.itemsize    # double-buffered x tiles
                + 2 * tb * out_dim * 4                # double-buffered out tiles
                + 2 * param_bytes                     # resident weights/biases
                + 3 * tb * max_hidden * 4             # f32 intermediates
                + (2 << 20))                          # compiler scratch headroom
    try:
        vmem_cap = int(pltpu.get_tpu_info().vmem_capacity_bytes)
    except Exception:
        vmem_cap = 64 * 1024 * 1024                   # v7x per-TC capacity
    vmem = int(min(max(vmem_est, 8 << 20), int(0.75 * vmem_cap)))

    return pl.pallas_call(
        mlp_kernel,
        out_shape=jax.ShapeDtypeStruct((B, out_dim), jnp.float32),
        grid=grid,
        in_specs=[pl.BlockSpec((tb, in_dim), lambda i: (i, 0)),
                  resident(w1), resident(b1),
                  resident(w2), resident(b2),
                  resident(w3), resident(b3),
                  resident(w4), resident(b4)],
        out_specs=pl.BlockSpec((tb, out_dim), lambda i: (i, 0)),
        compiler_params=pltpu.CompilerParams(
            dimension_semantics=("parallel",),
            vmem_limit_bytes=vmem),
        cost_estimate=pl.CostEstimate(flops=flops, transcendentals=0,
                                      bytes_accessed=bytes_accessed),
    )(x, w1, b1, w2, b2, w3, b3, w4, b4)


# ---------------------------------------------------------------------------
# Init + reference (PyTorch nn.Linear-style init, weights stored (in, out)).
# ---------------------------------------------------------------------------
def init_params(key, input_dim, h1, h2, h3, output_dim):
    dims = [(input_dim, h1), (h1, h2), (h2, h3), (h3, output_dim)]
    params = {}
    for i, (fan_in, fan_out) in enumerate(dims, start=1):
        key, kw, kb = jax.random.split(key, 3)
        bound = 1.0 / jnp.sqrt(jnp.float32(fan_in))
        params[f"w{i}"] = jax.random.uniform(
            kw, (fan_in, fan_out), jnp.float32, minval=-bound, maxval=bound)
        params[f"b{i}"] = jax.random.uniform(
            kb, (1, fan_out), jnp.float32, minval=-bound, maxval=bound)
    return params


def reference_mlp(x, p):
    h = jnp.maximum(x @ p["w1"] + p["b1"], 0.0)
    h = jnp.maximum(h @ p["w2"] + p["b2"], 0.0)
    h = jnp.maximum(h @ p["w3"] + p["b3"], 0.0)
    return h @ p["w4"] + p["b4"]


if __name__ == "__main__":
    key = jax.random.PRNGKey(0)
    batch, input_dim, h1, h2, h3, output_dim = 8, 32, 64, 64, 32, 1

    key, kx = jax.random.split(key)
    x = jax.random.normal(kx, (batch, input_dim), jnp.float32)
    params = init_params(key, input_dim, h1, h2, h3, output_dim)
    ref = reference_mlp(x, params)

    # ---- f32 MXU-input path: parity with the PyTorch-semantics reference ----
    prep_f32 = prepare_params(params, compute_dtype=jnp.float32)
    out_f32 = jax.block_until_ready(
        spiking_regressor_output_layer(x, prep_f32))
    assert out_f32.shape == (batch, output_dim)
    assert jnp.allclose(out_f32, ref, atol=1e-3, rtol=1e-3), "f32 mismatch"

    # ---- default bf16 MXU-input / f32-accumulate path (all generations) -----
    prep_bf16 = prepare_params(params)
    out_bf16 = jax.block_until_ready(
        spiking_regressor_output_layer(x, prep_bf16))
    assert out_bf16.shape == (batch, output_dim)
    assert jnp.allclose(out_bf16, ref, atol=5e-2, rtol=5e-2), "bf16 mismatch"

    # ---- multi-step grid + ragged last block (no batch padding anywhere) ----
    key, kx2 = jax.random.split(key)
    xb = jax.random.normal(kx2, (1040, input_dim), jnp.float32)
    refb = reference_mlp(xb, params)
    outb = jax.block_until_ready(
        spiking_regressor_output_layer(xb, prep_f32, block_rows=256))
    assert outb.shape == (1040, output_dim)
    assert jnp.allclose(outb, refb, atol=1e-3, rtol=1e-3), "gridded mismatch"

    print("KERNEL_OK")
</pallas_src>

<mosaic_0001>
module attributes {stable_mosaic.version = 11 : i64} {
  func.func @mlp_kernel(%arg0: i32, %arg1: memref<8x32xf32, #tpu.memory_space<vmem>>, %arg2: memref<32x128xf32, #tpu.memory_space<vmem>>, %arg3: memref<1x128xf32, #tpu.memory_space<vmem>>, %arg4: memref<128x128xf32, #tpu.memory_space<vmem>>, %arg5: memref<1x128xf32, #tpu.memory_space<vmem>>, %arg6: memref<128x128xf32, #tpu.memory_space<vmem>>, %arg7: memref<1x128xf32, #tpu.memory_space<vmem>>, %arg8: memref<128x1xf32, #tpu.memory_space<vmem>>, %arg9: memref<1x1xf32, #tpu.memory_space<vmem>>, %arg10: memref<8x1xf32, #tpu.memory_space<vmem>>) attributes {dimension_semantics = [#tpu.dimension_semantics<parallel>], iteration_bounds = array<i64: 1>, scalar_prefetch = 0 : i64, scratch_operands = 0 : i64, tpu.core_type = #tpu.core_type<tc>, window_params = [{transform_indices = @transform_0, window_bounds = array<i64: 8, 32>}, {pipeline_mode = #tpu.pipeline_mode<synchronous>, transform_indices = @transform_1, window_bounds = array<i64: 32, 128>}, {pipeline_mode = #tpu.pipeline_mode<synchronous>, transform_indices = @transform_2, window_bounds = array<i64: 1, 128>}, {pipeline_mode = #tpu.pipeline_mode<synchronous>, transform_indices = @transform_3, window_bounds = array<i64: 128, 128>}, {pipeline_mode = #tpu.pipeline_mode<synchronous>, transform_indices = @transform_4, window_bounds = array<i64: 1, 128>}, {pipeline_mode = #tpu.pipeline_mode<synchronous>, transform_indices = @transform_5, window_bounds = array<i64: 128, 128>}, {pipeline_mode = #tpu.pipeline_mode<synchronous>, transform_indices = @transform_6, window_bounds = array<i64: 1, 128>}, {pipeline_mode = #tpu.pipeline_mode<synchronous>, transform_indices = @transform_7, window_bounds = array<i64: 128, 1>}, {pipeline_mode = #tpu.pipeline_mode<synchronous>, transform_indices = @transform_8, window_bounds = array<i64: 1, 1>}, {transform_indices = @transform_9, window_bounds = array<i64: 8, 1>}]} {
    %c0 = arith.constant 0 : index
    %c0_0 = arith.constant 0 : index
    %0 = vector.load %arg1[%c0, %c0_0] : memref<8x32xf32, #tpu.memory_space<vmem>>, vector<8x32xf32>
    %c0_1 = arith.constant 0 : index
    %c0_2 = arith.constant 0 : index
    %1 = vector.load %arg2[%c0_1, %c0_2] : memref<32x128xf32, #tpu.memory_space<vmem>>, vector<32x128xf32>
    %cst = arith.constant dense<0.000000e+00> : vector<8x128xf32>
    %2 = tpu.matmul %0, %1, %cst {dimension_numbers = #tpu.dot_dimension_numbers<[1], [0], [0], [1], [0, 0, 1, 1], [], []>} : vector<8x32xf32>, vector<32x128xf32>, vector<8x128xf32> -> vector<8x128xf32>
    %c0_3 = arith.constant 0 : index
    %c0_4 = arith.constant 0 : index
    %3 = vector.load %arg3[%c0_3, %c0_4] : memref<1x128xf32, #tpu.memory_space<vmem>>, vector<1x128xf32>
    %4 = vector.broadcast %3 : vector<1x128xf32> to vector<8x128xf32>
    %5 = arith.addf %2, %4 : vector<8x128xf32>
    %cst_5 = arith.constant 0.000000e+00 : f32
    %6 = vector.broadcast %cst_5 : f32 to vector<8x128xf32>
    %7 = arith.maximumf %5, %6 : vector<8x128xf32>
    %c0_6 = arith.constant 0 : index
    %c0_7 = arith.constant 0 : index
    %8 = vector.load %arg4[%c0_6, %c0_7] : memref<128x128xf32, #tpu.memory_space<vmem>>, vector<128x128xf32>
    %cst_8 = arith.constant dense<0.000000e+00> : vector<8x128xf32>
    %9 = tpu.matmul %7, %8, %cst_8 {dimension_numbers = #tpu.dot_dimension_numbers<[1], [0], [0], [1], [0, 0, 1, 1], [], []>} : vector<8x128xf32>, vector<128x128xf32>, vector<8x128xf32> -> vector<8x128xf32>
    %c0_9 = arith.constant 0 : index
    %c0_10 = arith.constant 0 : index
    %10 = vector.load %arg5[%c0_9, %c0_10] : memref<1x128xf32, #tpu.memory_space<vmem>>, vector<1x128xf32>
    %11 = vector.broadcast %10 : vector<1x128xf32> to vector<8x128xf32>
    %12 = arith.addf %9, %11 : vector<8x128xf32>
    %cst_11 = arith.constant 0.000000e+00 : f32
    %13 = vector.broadcast %cst_11 : f32 to vector<8x128xf32>
    %14 = arith.maximumf %12, %13 : vector<8x128xf32>
    %c0_12 = arith.constant 0 : index
    %c0_13 = arith.constant 0 : index
    %15 = vector.load %arg6[%c0_12, %c0_13] : memref<128x128xf32, #tpu.memory_space<vmem>>, vector<128x128xf32>
    %cst_14 = arith.constant dense<0.000000e+00> : vector<8x128xf32>
    %16 = tpu.matmul %14, %15, %cst_14 {dimension_numbers = #tpu.dot_dimension_numbers<[1], [0], [0], [1], [0, 0, 1, 1], [], []>} : vector<8x128xf32>, vector<128x128xf32>, vector<8x128xf32> -> vector<8x128xf32>
    %c0_15 = arith.constant 0 : index
    %c0_16 = arith.constant 0 : index
    %17 = vector.load %arg7[%c0_15, %c0_16] : memref<1x128xf32, #tpu.memory_space<vmem>>, vector<1x128xf32>
    %18 = vector.broadcast %17 : vector<1x128xf32> to vector<8x128xf32>
    %19 = arith.addf %16, %18 : vector<8x128xf32>
    %cst_17 = arith.constant 0.000000e+00 : f32
    %20 = vector.broadcast %cst_17 : f32 to vector<8x128xf32>
    %21 = arith.maximumf %19, %20 : vector<8x128xf32>
    %c0_18 = arith.constant 0 : index
    %c0_19 = arith.constant 0 : index
    %22 = vector.load %arg8[%c0_18, %c0_19] : memref<128x1xf32, #tpu.memory_space<vmem>>, vector<128x1xf32>
    %cst_20 = arith.constant dense<0.000000e+00> : vector<8x1xf32>
    %23 = tpu.matmul %21, %22, %cst_20 {dimension_numbers = #tpu.dot_dimension_numbers<[1], [0], [0], [1], [0, 0, 1, 1], [], []>} : vector<8x128xf32>, vector<128x1xf32>, vector<8x1xf32> -> vector<8x1xf32>
    %c0_21 = arith.constant 0 : index
    %c0_22 = arith.constant 0 : index
    %24 = vector.load %arg9[%c0_21, %c0_22] : memref<1x1xf32, #tpu.memory_space<vmem>>, vector<1x1xf32>
    %25 = vector.broadcast %24 : vector<1x1xf32> to vector<8x1xf32>
    %26 = arith.addf %23, %25 : vector<8x1xf32>
    %c0_23 = arith.constant 0 : index
    %c0_24 = arith.constant 0 : index
    %27 = vector.load %arg10[%c0_23, %c0_24] : memref<8x1xf32, #tpu.memory_space<vmem>>, vector<8x1xf32>
    tpu.vector_store %arg10[%c0_23, %c0_24], %26 {strides = array<i32>} : memref<8x1xf32, #tpu.memory_space<vmem>>, vector<8x1xf32>,
    return
  }
  func.func @transform_0(%arg0: i32) -> (i32, i32) {
    %c0_i32 = arith.constant 0 : i32
    %c0_i32_0 = arith.constant 0 : i32
    return %arg0, %c0_i32 : i32, i32
  }
  func.func @transform_1(%arg0: i32) -> (i32, i32) {
    %c0_i32 = arith.constant 0 : i32
    %c0_i32_0 = arith.constant 0 : i32
    %c0_i32_1 = arith.constant 0 : i32
    return %c0_i32, %c0_i32_0 : i32, i32
  }
  func.func @transform_2(%arg0: i32) -> (i32, i32) {
    %c0_i32 = arith.constant 0 : i32
    %c0_i32_0 = arith.constant 0 : i32
    %c0_i32_1 = arith.constant 0 : i32
    return %c0_i32, %c0_i32_0 : i32, i32
  }
  func.func @transform_3(%arg0: i32) -> (i32, i32) {
    %c0_i32 = arith.constant 0 : i32
    %c0_i32_0 = arith.constant 0 : i32
    %c0_i32_1 = arith.constant 0 : i32
    return %c0_i32, %c0_i32_0 : i32, i32
  }
  func.func @transform_4(%arg0: i32) -> (i32, i32) {
    %c0_i32 = arith.constant 0 : i32
    %c0_i32_0 = arith.constant 0 : i32
    %c0_i32_1 = arith.constant 0 : i32
    return %c0_i32, %c0_i32_0 : i32, i32
  }
  func.func @transform_5(%arg0: i32) -> (i32, i32) {
    %c0_i32 = arith.constant 0 : i32
    %c0_i32_0 = arith.constant 0 : i32
    %c0_i32_1 = arith.constant 0 : i32
    return %c0_i32, %c0_i32_0 : i32, i32
  }
  func.func @transform_6(%arg0: i32) -> (i32, i32) {
    %c0_i32 = arith.constant 0 : i32
    %c0_i32_0 = arith.constant 0 : i32
    %c0_i32_1 = arith.constant 0 : i32
    return %c0_i32, %c0_i32_0 : i32, i32
  }
  func.func @transform_7(%arg0: i32) -> (i32, i32) {
    %c0_i32 = arith.constant 0 : i32
    %c0_i32_0 = arith.constant 0 : i32
    %c0_i32_1 = arith.constant 0 : i32
    return %c0_i32, %c0_i32_0 : i32, i32
  }
  func.func @transform_8(%arg0: i32) -> (i32, i32) {
    %c0_i32 = arith.constant 0 : i32
    %c0_i32_0 = arith.constant 0 : i32
    %c0_i32_1 = arith.constant 0 : i32
    return %c0_i32, %c0_i32_0 : i32, i32
  }
  func.func @transform_9(%arg0: i32) -> (i32, i32) {
    %c0_i32 = arith.constant 0 : i32
    %c0_i32_0 = arith.constant 0 : i32
    return %arg0, %c0_i32 : i32, i32
  }
}

</mosaic_0001>

<bundles_post_ra>
// kernel: tpu_custom_call.1
= control target key start
LH: loop header
LB: loop body
LE: loop exit
PB: predicated region body
PF: predicated region fallthrough
CT: control target
= control target key end

     0   :  { %s934_s0 = inlined_call_operand.vmem [shape: f32[8,32], index: 0, kind: input, shape index: {}]   ;;  %s935_s1 = inlined_call_operand.hbm [shape: f32[32,128], index: 1, kind: input, shape index: {}]   ;;  %s936_s2 = inlined_call_operand.hbm [shape: f32[1,128], index: 2, kind: input, shape index: {}]   ;;  %s937_s3 = inlined_call_operand.vmem [shape: f32[128,128], index: 3, kind: input, shape index: {}]   ;;  %s938_s4 = inlined_call_operand.vmem [shape: f32[1,128], index: 4, kind: input, shape index: {}]   ;;  %s939_s5 = inlined_call_operand.hbm [shape: f32[128,128], index: 5, kind: input, shape index: {}]   ;;  %s940_s6 = inlined_call_operand.vmem [shape: f32[1,128], index: 6, kind: input, shape index: {}]   ;;  %s941_s7 = inlined_call_operand.vmem [shape: f32[128,1], index: 7, kind: input, shape index: {}]   ;;  %s942_s8 = inlined_call_operand.<no memory space> [shape: f32[1,1], index: 8, kind: input, shape index: {}]   ;;  %s943_s9 = inlined_call_operand.vmem [shape: f32[8,1], index: 9, kind: output, shape index: {}]  }
   0x1   :  { %v14_v0 = vstv %s942_s8 }
   0x2   :  { %15 = vst [vmem:[#allocation2] sm:$0x1] %v14_v0 }
   0x3   :  { %16 = vsyncpa [#allocation4], 0 }
   0x4   :  { %17 = vsyncpa [#allocation6], 0  ;;  %s697_s11 = smov [#allocation5]   ;;  %s698_s13 = smov [#allocation3]  }
   0x5   :  { %s38_s12 = sshll.u32 %s697_s11, 4  ;;  %s25_s14 = sshll.u32 %s698_s13, 4  ;;  %s39_s12 = int_to_ptr.vmem [resolvable:$true] %s38_s12  ;;  %s26_s14 = int_to_ptr.vmem [resolvable:$true] %s25_s14 }
   0x6   :  { %s641_s15 = scalar_lea.vmem %s39_s12, 16  ;;  %s645_s16 = scalar_lea.vmem %s39_s12, 32 }
   0x7   :  { %p642_p0 = scmp.ne.s32.totalorder %s39_s12, %s641_s15  ;;  %p646_p1 = scmp.lt.s32.totalorder %s39_s12, %s39_s12 }
   0x8   :  { %p647_p2 = scmp.lt.s32.totalorder %s645_s16, %s641_s15 }
   0xa   :  { %p648_p3 = por %p647_p2, %p646_p1 }
   0xc   :  { %p649_p4 = pnand %p648_p3, %p642_p0 }
   0xe   :  { %652 = shalt.err (!%p649_p4)
}
   0xf   :  { %41 = dma.hbm_to_vmem [thread:$0]  %s936_s2, 16, %s39_s12, [#allocation6]  }
  0x10   :  { %s661_s8 = scalar_lea.vmem %s26_s14, 512  ;;  %p666_p6 = scmp.lt.s32.totalorder %s26_s14, %s26_s14 }
  0x11   :  { %p662_p5 = scmp.ne.s32.totalorder %s26_s14, %s661_s8  ;;  %p667_p7 = scmp.lt.s32.totalorder %s661_s8, %s661_s8 }
  0x13   :  { %p668_p8 = por %p667_p7, %p666_p6 }
  0x15   :  { %p669_p9 = pnand %p668_p8, %p662_p5 }
  0x17   :  { %672 = shalt.err (!%p669_p9)
}
  0x18   :  { %s699_s19 = smov 128   ;;  %s700_s20 = smov 8  }
  0x19   :  { %31 = dma.hbm_to_vmem [thread:$0]  %s935_s1, 512, %s26_s14, [#allocation4], %s699_s19, %s699_s19, %s700_s20  }
  0x1a   :  { %s701_s23 = smov [#allocation7]  }
  0x1b   :  { %s51_s24 = sshll.u32 %s701_s23, 4  ;;  %s52_s24 = int_to_ptr.vmem [resolvable:$true] %s51_s24 }
  0x1c   :  { %s681_s25 = scalar_lea.vmem %s52_s24, 2048  ;;  %p686_p11 = scmp.lt.s32.totalorder %s52_s24, %s52_s24 }
  0x1d   :  { %p682_p10 = scmp.ne.s32.totalorder %s52_s24, %s681_s25  ;;  %p687_p12 = scmp.lt.s32.totalorder %s681_s25, %s681_s25 }
  0x1f   :  { %p688_p13 = por %p687_p12, %p686_p11 }
  0x21   :  { %p689_p0 = pnand %p688_p13, %p682_p10 }
  0x23   :  { %692 = shalt.err (!%p689_p0)
}
  0x24   :  { %57 = dma.hbm_to_vmem [thread:$0]  %s939_s5, 2048, %s52_s24, [#allocation6], %s699_s19, %s699_s19, %s700_s20  }
  0x25   :  { %693 = dma.done.wait [#allocation4], 512  }
  0x26   :  { %694 = vsyncadd [#allocation4], 4294966784 }
  0x27   :  { %695 = dma.done.wait [#allocation6], 2064  }
  0x28   :  { %696 = vsyncadd [#allocation6], 4294965232  ;;  %v702_v1 = vmov 0.0   ;;  %vm703_vm0 = vmmov 0   ;;  %v77_v2 = vld [vmem:[#allocation3 + $0x18] sm:$0xff]  ;;  %v76_v3 = vld [vmem:[#allocation3 + $0x10] sm:$0xff] }
  0x29   :  { %510 = vmatprep.subr.mxu0 %v702_v1  ;;  %518 = vmatprep.mubr.msk.f32.mxu0 %vm703_vm0, %v702_v1  ;;  %v175_v4 = vld [vmem:[%s937_s3 + $0x78] sm:$0xff]  ;;  %v75_v5 = vld [vmem:[#allocation3 + $0x8] sm:$0xff]  ;;  %v74_v8 = vld [vmem:[#allocation3] sm:$0xff]  ;;  %vm85_vm1 = vcmask 261120   ;;  %vm441_vm2 = vcmask 7168  }
  0x2a   :  { %521 = vmatprep.subr.mxu1 %v702_v1  ;;  %553 = vmatprep.mubr.msk.f32.mxu1 %vm703_vm0, %v702_v1  ;;  %v174_v6 = vld [vmem:[%s937_s3 + $0x70] sm:$0xff]  ;;  %v173_v7 = vld [vmem:[%s937_s3 + $0x68] sm:$0xff]  ;;  %v73_v9 = vld [vmem:[%s934_s0] sm:$0xff] }
  0x2b   :  { %511 = vmatpush3.msra.mxu0 %v77_v2  ;;  %522 = vmatpush3.msra.mxu1 %v175_v4  ;;  %v172_v10 = vld [vmem:[%s937_s3 + $0x60] sm:$0xff]  ;;  %v171_v11 = vld [vmem:[%s937_s3 + $0x58] sm:$0xff]  ;;  %v170_v12 = vld [vmem:[%s937_s3 + $0x50] sm:$0xff] }
  0x2c   :  { %512 = vmatprep.subr.mxu0 %v702_v1  ;;  %523 = vmatprep.subr.mxu1 %v702_v1  ;;  %v169_v13 = vld [vmem:[%s937_s3 + $0x48] sm:$0xff]  ;;  %v168_v14 = vld [vmem:[%s937_s3 + $0x40] sm:$0xff]  ;;  %v167_v15 = vld [vmem:[%s937_s3 + $0x38] sm:$0xff] }
  0x2d   :  { %513 = vmatpush3.msra.mxu0 %v76_v3  ;;  %524 = vmatpush3.msra.mxu1 %v174_v6  ;;  %v166_v16 = vld [vmem:[%s937_s3 + $0x30] sm:$0xff]  ;;  %v165_v17 = vld [vmem:[%s937_s3 + $0x28] sm:$0xff]  ;;  %v164_v18 = vld [vmem:[%s937_s3 + $0x20] sm:$0xff] }
  0x2e   :  { %514 = vmatprep.subr.mxu0 %v702_v1  ;;  %525 = vmatprep.subr.mxu1 %v702_v1  ;;  %v163_v19 = vld [vmem:[%s937_s3 + $0x18] sm:$0xff]  ;;  %v162_v20 = vld [vmem:[%s937_s3 + $0x10] sm:$0xff]  ;;  %v161_v21 = vld [vmem:[%s937_s3 + $0x8] sm:$0xff] }
  0x2f   :  { %515 = vmatpush3.msra.mxu0 %v75_v5  ;;  %526 = vmatpush3.msra.mxu1 %v173_v7  ;;  %v160_v22 = vld [vmem:[%s937_s3] sm:$0xff]  ;;  %v268_v24 = vld [vmem:[#allocation7 + $0x70] sm:$0xff]  ;;  %v267_v25 = vld [vmem:[#allocation7 + $0x68] sm:$0xff] }
  0x30   :  { %516 = vmatprep.subr.mxu0 %v702_v1  ;;  %527 = vmatprep.subr.mxu1 %v702_v1  ;;  %v269_v23 = vld [vmem:[#allocation7 + $0x78] sm:$0xff]  ;;  %v266_v26 = vld [vmem:[#allocation7 + $0x60] sm:$0xff]  ;;  %v264_v28 = vld [vmem:[#allocation7 + $0x50] sm:$0xff] }
  0x31   :  { %517 = vmatpush3.msra.mxu0 %v74_v8  ;;  %528 = vmatpush3.msra.mxu1 %v172_v10  ;;  %v265_v27 = vld [vmem:[#allocation7 + $0x58] sm:$0xff]  ;;  %v263_v29 = vld [vmem:[#allocation7 + $0x48] sm:$0xff]  ;;  %v262_v30 = vld [vmem:[#allocation7 + $0x40] sm:$0xff] }
  0x32   :  { %519 = vmatmul.mubr.msk.f32.vlgmr.msra.gmra.mxu0 %vm85_vm1, %v73_v9  ;;  %529 = vmatprep.subr.mxu1 %v702_v1  ;;  %v261_v31 = vld [vmem:[#allocation7 + $0x38] sm:$0xff]  ;;  %v260_v32 = vld [vmem:[#allocation7 + $0x30] sm:$0xff]  ;;  %v259_v33 = vld [vmem:[#allocation7 + $0x28] sm:$0xff] }
  0x33   :  { %556 = vmatprep.subr.mxu0 %v702_v1  ;;  %530 = vmatpush3.msra.mxu1 %v171_v11  ;;  %v258_v34 = vld [vmem:[#allocation7 + $0x20] sm:$0xff]  ;;  %v257_v35 = vld [vmem:[#allocation7 + $0x18] sm:$0xff]  ;;  %v256_v41 = vld [vmem:[#allocation7 + $0x10] sm:$0xff] }
  0x34   :  { %588 = vmatprep.mubr.msk.f32.mxu0 %vm703_vm0, %v702_v1  ;;  %531 = vmatprep.subr.mxu1 %v702_v1  ;;  %v449_v36 = vld [vmem:[#allocation5] ss:$0 sm:$0xff]  ;;  %v255_v42 = vld [vmem:[#allocation7 + $0x8] sm:$0xff]  ;;  %v254_v43 = vld [vmem:[#allocation7] sm:$0xff] }
  0x35   :  { %532 = vmatpush3.msra.mxu1 %v170_v12  ;;  %557 = vmatpush3.msra.mxu0 %v269_v23  ;;  %v363_v44 = vld [vmem:[%s941_s7 + $0x78] sm:$0xff]  ;;  %v362_v45 = vld [vmem:[%s941_s7 + $0x70] sm:$0xff]  ;;  %v361_v46 = vld [vmem:[%s941_s7 + $0x68] sm:$0xff] }
  0x36   :  { %533 = vmatprep.subr.mxu1 %v702_v1  ;;  %558 = vmatprep.subr.mxu0 %v702_v1  ;;  %v360_v47 = vld [vmem:[%s941_s7 + $0x60] sm:$0xff]  ;;  %v359_v48 = vld [vmem:[%s941_s7 + $0x58] sm:$0xff]  ;;  %v358_v49 = vld [vmem:[%s941_s7 + $0x50] sm:$0xff] }
  0x37   :  { %534 = vmatpush3.msra.mxu1 %v169_v13  ;;  %559 = vmatpush3.msra.mxu0 %v268_v24  ;;  %v357_v50 = vld [vmem:[%s941_s7 + $0x48] sm:$0xff]  ;;  %v356_v51 = vld [vmem:[%s941_s7 + $0x40] sm:$0xff]  ;;  %v355_v52 = vld [vmem:[%s941_s7 + $0x38] sm:$0xff] }
  0x38   :  { %535 = vmatprep.subr.mxu1 %v702_v1  ;;  %560 = vmatprep.subr.mxu0 %v702_v1  ;;  %v354_v53 = vld [vmem:[%s941_s7 + $0x30] sm:$0xff]  ;;  %v353_v54 = vld [vmem:[%s941_s7 + $0x28] sm:$0xff]  ;;  %v352_v55 = vld [vmem:[%s941_s7 + $0x20] sm:$0xff] }
  0x39   :  { %536 = vmatpush3.msra.mxu1 %v168_v14  ;;  %561 = vmatpush3.msra.mxu0 %v267_v25  ;;  %v351_v56 = vld [vmem:[%s941_s7 + $0x18] sm:$0xff]  ;;  %v451_v57 = vld [vmem:[%s938_s4] ss:$0 sm:$0xff]  ;;  %v350_v62 = vld [vmem:[%s941_s7 + $0x10] sm:$0xff] }
  0x3a   :  { %537 = vmatprep.subr.mxu1 %v702_v1  ;;  %562 = vmatprep.subr.mxu0 %v702_v1  ;;  %v349_v63 = vld [vmem:[%s941_s7 + $0x8] sm:$0xff]  ;;  %v348_v0 = vld [vmem:[%s941_s7] sm:$0xff] }
  0x3b   :  { %538 = vmatpush3.msra.mxu1 %v167_v15  ;;  %563 = vmatpush3.msra.mxu0 %v266_v26  ;;  %v452_v2 = vld [vmem:[%s940_s6] ss:$0 sm:$0xff] }
  0x3c   :  { %539 = vmatprep.subr.mxu1 %v702_v1  ;;  %564 = vmatprep.subr.mxu0 %v702_v1  ;;  %v453_v7 = vld [vmem:[#allocation2] ss:$0 sm:$0xff] }
  0x3d   :  { %540 = vmatpush3.msra.mxu1 %v166_v16  ;;  %565 = vmatpush3.msra.mxu0 %v265_v27 }
  0x3e   :  { %541 = vmatprep.subr.mxu1 %v702_v1  ;;  %566 = vmatprep.subr.mxu0 %v702_v1 }
  0x3f   :  { %542 = vmatpush3.msra.mxu1 %v165_v17  ;;  %567 = vmatpush3.msra.mxu0 %v264_v28 }
  0x40   :  { %543 = vmatprep.subr.mxu1 %v702_v1  ;;  %568 = vmatprep.subr.mxu0 %v702_v1 }
  0x41   :  { %544 = vmatpush3.msra.mxu1 %v164_v18  ;;  %569 = vmatpush3.msra.mxu0 %v263_v29 }
  0x42   :  { %545 = vmatprep.subr.mxu1 %v702_v1  ;;  %570 = vmatprep.subr.mxu0 %v702_v1 }
  0x43   :  { %546 = vmatpush3.msra.mxu1 %v163_v19  ;;  %571 = vmatpush3.msra.mxu0 %v262_v30 }
  0x44   :  { %547 = vmatprep.subr.mxu1 %v702_v1  ;;  %572 = vmatprep.subr.mxu0 %v702_v1 }
  0x45   :  { %548 = vmatpush3.msra.mxu1 %v162_v20  ;;  %573 = vmatpush3.msra.mxu0 %v261_v31 }
  0x46   :  { %549 = vmatprep.subr.mxu1 %v702_v1  ;;  %574 = vmatprep.subr.mxu0 %v702_v1 }
  0x47   :  { %550 = vmatpush3.msra.mxu1 %v161_v21  ;;  %575 = vmatpush3.msra.mxu0 %v260_v32 }
  0x48   :  { %551 = vmatprep.subr.mxu1 %v702_v1  ;;  %576 = vmatprep.subr.mxu0 %v702_v1 }
  0x49   :  { %552 = vmatpush3.msra.mxu1 %v160_v22  ;;  %577 = vmatpush3.msra.mxu0 %v259_v33 }
  0x4a   :  { %591 = vmatprep.subr.mxu1 %v702_v1  ;;  %578 = vmatprep.subr.mxu0 %v702_v1 }
  0x4b   :  { %579 = vmatpush3.msra.mxu0 %v258_v34 }
  0x4c   :  { %580 = vmatprep.subr.mxu0 %v702_v1 }
  0x4d   :  { %581 = vmatpush3.msra.mxu0 %v257_v35 }
  0x4e   :  { %582 = vmatprep.subr.mxu0 %v702_v1 }
  0x4f   :  { %583 = vmatpush3.msra.mxu0 %v256_v41 }
  0x50   :  { %584 = vmatprep.subr.mxu0 %v702_v1 }
  0x51   :  { %585 = vmatpush3.msra.mxu0 %v255_v42 }
  0x52   :  { %586 = vmatprep.subr.mxu0 %v702_v1 }
  0x53   :  { %587 = vmatpush3.msra.mxu0 %v254_v43 }
  0xf2   :  { %v155_v37 = vpop.f32.mrf.mxu0 }
  0xf3   :  { %v156_v38 = vadd.f32 %v449_v36, %v155_v37 }
  0xf4   :  { %v520_v39 = vpop.f32.mrf.mxu0 }
  0xf5   :  { %v159_v40 = vmax.f32 %v156_v38, 0.0 }
  0xf7   :  { %554 = vmatmul.mubr.f32.vlgmr.msra.gmra.mxu1 %v159_v40 }
  0xf8   :  { %623 = vmatprep.mubr.msk.f32.mxu1 %vm703_vm0, %v702_v1  ;;  %592 = vmatpush3.msra.mxu1 %v363_v44 }
  0xf9   :  { %593 = vmatprep.subr.mxu1 %v702_v1 }
  0xfa   :  { %594 = vmatpush3.msra.mxu1 %v362_v45 }
  0xfb   :  { %595 = vmatprep.subr.mxu1 %v702_v1 }
  0xfc   :  { %596 = vmatpush3.msra.mxu1 %v361_v46 }
  0xfd   :  { %597 = vmatprep.subr.mxu1 %v702_v1 }
  0xfe   :  { %598 = vmatpush3.msra.mxu1 %v360_v47 }
  0xff   :  { %599 = vmatprep.subr.mxu1 %v702_v1 }
 0x100   :  { %600 = vmatpush3.msra.mxu1 %v359_v48 }
 0x101   :  { %601 = vmatprep.subr.mxu1 %v702_v1 }
 0x102   :  { %602 = vmatpush3.msra.mxu1 %v358_v49 }
 0x103   :  { %603 = vmatprep.subr.mxu1 %v702_v1 }
 0x104   :  { %604 = vmatpush3.msra.mxu1 %v357_v50 }
 0x105   :  { %605 = vmatprep.subr.mxu1 %v702_v1 }
 0x106   :  { %606 = vmatpush3.msra.mxu1 %v356_v51 }
 0x107   :  { %607 = vmatprep.subr.mxu1 %v702_v1 }
 0x108   :  { %608 = vmatpush3.msra.mxu1 %v355_v52 }
 0x109   :  { %609 = vmatprep.subr.mxu1 %v702_v1 }
 0x10a   :  { %610 = vmatpush3.msra.mxu1 %v354_v53 }
 0x10b   :  { %611 = vmatprep.subr.mxu1 %v702_v1 }
 0x10c   :  { %612 = vmatpush3.msra.mxu1 %v353_v54 }
 0x10d   :  { %613 = vmatprep.subr.mxu1 %v702_v1 }
 0x10e   :  { %614 = vmatpush3.msra.mxu1 %v352_v55 }
 0x10f   :  { %615 = vmatprep.subr.mxu1 %v702_v1 }
 0x110   :  { %616 = vmatpush3.msra.mxu1 %v351_v56 }
 0x111   :  { %617 = vmatprep.subr.mxu1 %v702_v1 }
 0x112   :  { %618 = vmatpush3.msra.mxu1 %v350_v62 }
 0x113   :  { %619 = vmatprep.subr.mxu1 %v702_v1 }
 0x114   :  { %620 = vmatpush3.msra.mxu1 %v349_v63 }
 0x115   :  { %621 = vmatprep.subr.mxu1 %v702_v1 }
 0x116   :  { %622 = vmatpush3.msra.mxu1 %v348_v0 }
 0x1b7   :  { %v249_v58 = vpop.f32.mrf.mxu1 }
 0x1b8   :  { %v250_v59 = vadd.f32 %v451_v57, %v249_v58 }
 0x1b9   :  { %v555_v60 = vpop.f32.mrf.mxu1 }
 0x1ba   :  { %v253_v61 = vmax.f32 %v250_v59, 0.0 }
 0x1bc   :  { %589 = vmatmul.mubr.f32.vlgmr.msra.gmra.mxu0 %v253_v61 }
 0x27c   :  { %v343_v3 = vpop.f32.mrf.mxu0 }
 0x27d   :  { %v344_v4 = vadd.f32 %v452_v2, %v343_v3 }
 0x27e   :  { %v590_v5 = vpop.f32.mrf.mxu0 }
 0x27f   :  { %v347_v6 = vmax.f32 %v344_v4, 0.0 }
 0x281   :  { %624 = vmatmul.mubr.f32.vlgmr.msra.gmra.mxu1 %v347_v6 }
 0x341   :  { %v437_v8 = vpop.f32.mrf.mxu1 }
 0x342   :  { %v438_v9 = vadd.f32 %v453_v7, %v437_v8 }
 0x343   :  { %v625_v10 = vpop.f32.mrf.mxu1 }
 0x344   :  { %442 = vst.msk [vmem:[%s943_s9] sm:$0xff] %vm441_vm2, %v438_v9 }
 0x345   :  { %447 = vsyncpa [#allocation4], 1 }
 0x346   :  { %448 = vsyncpa [#allocation6], 1 }

</bundles_post_ra>
